<compile_context>
chip_gen: v7x
topology: tpu7x:2x2x1
jax: 0.10.0
libtpu: 0.0.40
codegen_flags: <defaults>
</compile_context>

<pallas_src>
import numpy as np

import jax
import jax.numpy as jnp
from jax.experimental import pallas as pl
from jax.experimental import pallas as _pl_unused  # noqa: F401
from jax.experimental.pallas import tpu as pltpu


# ----------------------------------------------------------------------------
# Trace-time (host, numpy) 1-D linear-interp weight matrix, PyTorch half-pixel
# align_corners=False convention.  Integer index math, no float equality.
# Returns (out_size, in_size) f32; rows sum to 1 (edge clamping folds into idx0==idx1).
# ----------------------------------------------------------------------------
def _interp_matrix_np(out_size: int, in_size: int) -> np.ndarray:
    o = np.arange(out_size, dtype=np.float64)
    scale = in_size / out_size
    src = (o + 0.5) * scale - 0.5
    src = np.clip(src, 0.0, in_size - 1.0)
    idx0 = np.minimum(np.floor(src).astype(np.int64), in_size - 1)
    idx1 = np.minimum(idx0 + 1, in_size - 1)
    lam = (src - idx0).astype(np.float32)
    w = np.zeros((out_size, in_size), dtype=np.float32)
    rows = np.arange(out_size)
    np.add.at(w, (rows, idx0), 1.0 - lam)
    np.add.at(w, (rows, idx1), lam)
    return w


# ----------------------------------------------------------------------------
# Kernel: out_tile = (Wh_tile @ latent) @ WwT_tile     (all f32)
# latent is replicated across the grid; Wh / Ww^T tiles are sliced by index_map.
# ----------------------------------------------------------------------------
def _bilinear_interp_kernel(latent_ref, wh_ref, wwt_ref, out_ref):
    tmp = jnp.dot(wh_ref[...], latent_ref[...], preferred_element_type=jnp.float32)
    out_ref[...] = jnp.dot(tmp, wwt_ref[...], preferred_element_type=jnp.float32)


def _pick_tile(total: int, base: int, cap: int) -> int:
    """Largest multiple of `base` that divides `total`, capped; else the full extent."""
    if total <= cap or total % base != 0:
        return total
    t = (cap // base) * base
    while total % t != 0:
        t -= base
    return t


def initial_condition_interp_forward(latent: jnp.ndarray, dims) -> jnp.ndarray:
    """Forward pass of InitialConditionInterp (2-D / bilinear case).

    latent: (1, 1, H_in, W_in) float32 parameter (NCHW).
    dims:   (H_out, W_out) target spatial shape.
    Returns an array of shape `dims` (== latent2source(latent).view(dims) in PyTorch).
    """
    h_in, w_in = int(latent.shape[-2]), int(latent.shape[-1])
    h_out, w_out = int(dims[0]), int(dims[1])

    if (h_in, w_in) == (h_out, w_out):
        # latent2source early-return branch: no interpolation needed.
        return latent.reshape((h_out, w_out))

    latent_2d = latent.reshape(h_in, w_in).astype(jnp.float32)

    # Static interpolation weights, built on host at trace time.
    wh = jnp.asarray(_interp_matrix_np(h_out, h_in))                       # (H_out, H_in)
    wwt = jnp.asarray(np.ascontiguousarray(_interp_matrix_np(w_out, w_in).T))  # (W_in, W_out)

    # Output tiling: lane-dense (multiple of 128) columns, multiple-of-8 rows when the
    # output shape allows; otherwise a single full block (exempt from (8,128) rule).
    tm = _pick_tile(h_out, base=8, cap=256)
    tn = _pick_tile(w_out, base=128, cap=512)
    grid = (h_out // tm, w_out // tn)

    flops = 2 * (h_out * h_in * w_in + h_out * w_in * w_out)
    bytes_accessed = 4 * (h_in * w_in + h_out * h_in + w_in * w_out + h_out * w_out)
    cost = pl.CostEstimate(flops=int(flops), transcendentals=0,
                           bytes_accessed=int(bytes_accessed))

    out = pl.pallas_call(
        _bilinear_interp_kernel,
        out_shape=jax.ShapeDtypeStruct((h_out, w_out), jnp.float32),
        grid=grid,
        in_specs=[
            pl.BlockSpec((h_in, w_in), lambda i, j: (0, 0)),   # latent, replicated
            pl.BlockSpec((tm, h_in), lambda i, j: (i, 0)),     # Wh row-tile
            pl.BlockSpec((w_in, tn), lambda i, j: (0, j)),     # Ww^T col-tile
        ],
        out_specs=pl.BlockSpec((tm, tn), lambda i, j: (i, j)),
        compiler_params=pltpu.CompilerParams(
            dimension_semantics=("parallel", "parallel")),
        cost_estimate=cost,
    )(latent_2d, wh, wwt)
    return out


# ----------------------------------------------------------------------------
# Main
# ----------------------------------------------------------------------------
if __name__ == "__main__":
    # Module config: InitialConditionInterp([16, 16], [8, 8])
    dims = (16, 16)
    hidden_dim = (8, 8)
    scale = 1.0 / (hidden_dim[0] * hidden_dim[1])

    # Deterministic parameter init (mirrors scale * torch.rand(1, 1, *hidden_dim)).
    key = jax.random.PRNGKey(0)
    latent = scale * jax.random.uniform(
        key, (1, 1, hidden_dim[0], hidden_dim[1]), dtype=jnp.float32
    )

    out = initial_condition_interp_forward(latent, dims)
    out = jax.block_until_ready(out)
    assert out.shape == dims and out.dtype == jnp.float32

    # Independent reference: jax.image.resize('bilinear') uses the same half-pixel,
    # align_corners=False convention as F.interpolate for upsampling.
    ref = jax.image.resize(latent.reshape(hidden_dim), dims, method="bilinear")
    assert jnp.allclose(out, ref, atol=1e-5, rtol=1e-5), "mismatch vs jax.image.resize"

    # Identity branch (latent.shape[2:] == dims) check.
    same = initial_condition_interp_forward(latent, hidden_dim)
    assert jnp.allclose(same, latent.reshape(hidden_dim))

    # Larger dims -> exercises the tiled, lane-dense, parallel-grid path (2x2 grid).
    big_dims = (512, 1024)
    out_big = jax.block_until_ready(initial_condition_interp_forward(latent, big_dims))
    ref_big = jax.image.resize(latent.reshape(hidden_dim), big_dims, method="bilinear")
    assert out_big.shape == big_dims
    assert jnp.allclose(out_big, ref_big, atol=1e-5, rtol=1e-5), "mismatch (tiled path)"

    print("KERNEL_OK")
</pallas_src>

<mosaic_0001>
module attributes {stable_mosaic.version = 11 : i64} {
  func.func @_bilinear_interp_kernel(%arg0: i32, %arg1: i32, %arg2: memref<8x8xf32, #tpu.memory_space<vmem>>, %arg3: memref<16x8xf32, #tpu.memory_space<vmem>>, %arg4: memref<8x16xf32, #tpu.memory_space<vmem>>, %arg5: memref<16x16xf32, #tpu.memory_space<vmem>>) attributes {dimension_semantics = [#tpu.dimension_semantics<parallel>, #tpu.dimension_semantics<parallel>], iteration_bounds = array<i64: 1, 1>, scalar_prefetch = 0 : i64, scratch_operands = 0 : i64, tpu.core_type = #tpu.core_type<tc>, window_params = [{pipeline_mode = #tpu.pipeline_mode<synchronous>, transform_indices = @transform_0, window_bounds = array<i64: 8, 8>}, {transform_indices = @transform_1, window_bounds = array<i64: 16, 8>}, {transform_indices = @transform_2, window_bounds = array<i64: 8, 16>}, {transform_indices = @transform_3, window_bounds = array<i64: 16, 16>}]} {
    %c0 = arith.constant 0 : index
    %c0_0 = arith.constant 0 : index
    %0 = vector.load %arg3[%c0, %c0_0] : memref<16x8xf32, #tpu.memory_space<vmem>>, vector<16x8xf32>
    %c0_1 = arith.constant 0 : index
    %c0_2 = arith.constant 0 : index
    %1 = vector.load %arg2[%c0_1, %c0_2] : memref<8x8xf32, #tpu.memory_space<vmem>>, vector<8x8xf32>
    %cst = arith.constant dense<0.000000e+00> : vector<16x8xf32>
    %2 = tpu.matmul %0, %1, %cst {dimension_numbers = #tpu.dot_dimension_numbers<[1], [0], [0], [1], [0, 0, 1, 1], [], []>} : vector<16x8xf32>, vector<8x8xf32>, vector<16x8xf32> -> vector<16x8xf32>
    %c0_3 = arith.constant 0 : index
    %c0_4 = arith.constant 0 : index
    %3 = vector.load %arg4[%c0_3, %c0_4] : memref<8x16xf32, #tpu.memory_space<vmem>>, vector<8x16xf32>
    %cst_5 = arith.constant dense<0.000000e+00> : vector<16x16xf32>
    %4 = tpu.matmul %2, %3, %cst_5 {dimension_numbers = #tpu.dot_dimension_numbers<[1], [0], [0], [1], [0, 0, 1, 1], [], []>} : vector<16x8xf32>, vector<8x16xf32>, vector<16x16xf32> -> vector<16x16xf32>
    %c0_6 = arith.constant 0 : index
    %c0_7 = arith.constant 0 : index
    %5 = vector.load %arg5[%c0_6, %c0_7] : memref<16x16xf32, #tpu.memory_space<vmem>>, vector<16x16xf32>
    tpu.vector_store %arg5[%c0_6, %c0_7], %4 {strides = array<i32>} : memref<16x16xf32, #tpu.memory_space<vmem>>, vector<16x16xf32>,
    return
  }
  func.func @transform_0(%arg0: i32, %arg1: i32) -> (i32, i32) {
    %c0_i32 = arith.constant 0 : i32
    %c0_i32_0 = arith.constant 0 : i32
    %c0_i32_1 = arith.constant 0 : i32
    return %c0_i32, %c0_i32_0 : i32, i32
  }
  func.func @transform_1(%arg0: i32, %arg1: i32) -> (i32, i32) {
    %c0_i32 = arith.constant 0 : i32
    %c0_i32_0 = arith.constant 0 : i32
    return %arg0, %c0_i32 : i32, i32
  }
  func.func @transform_2(%arg0: i32, %arg1: i32) -> (i32, i32) {
    %c0_i32 = arith.constant 0 : i32
    %c0_i32_0 = arith.constant 0 : i32
    return %c0_i32, %arg1 : i32, i32
  }
  func.func @transform_3(%arg0: i32, %arg1: i32) -> (i32, i32) {
    %c0_i32 = arith.constant 0 : i32
    return %arg0, %arg1 : i32, i32
  }
}

</mosaic_0001>

<bundles_post_ra>
// kernel: tpu_custom_call.1
= control target key start
LH: loop header
LB: loop body
LE: loop exit
PB: predicated region body
PF: predicated region fallthrough
CT: control target
= control target key end

     0   :  { %vm18_vm0 = vcmask 64512   ;;  %s295_s0 = inlined_call_operand.vmem [shape: f32[8,8], index: 0, kind: input, shape index: {}]   ;;  %s296_s1 = inlined_call_operand.vmem [shape: f32[16,8], index: 1, kind: input, shape index: {}]   ;;  %s297_s2 = inlined_call_operand.vmem [shape: f32[8,16], index: 2, kind: input, shape index: {}]   ;;  %s298_s3 = inlined_call_operand.hbm [shape: f32[16,16], index: 3, kind: output, shape index: {}]  }
   0x1   :  { %v17_v0 = vld [vmem:[%s295_s0] sm:$0xff]  ;;  %v16_v2 = vld [vmem:[%s296_s1 + $0x8] sm:$0xff] }
   0x2   :  { %v15_v1 = vld [vmem:[%s296_s1] sm:$0xff]  ;;  %211 = vmatprep.subr.mxu0 %v17_v0 }
   0x3   :  { %213 = vmatprep.mubr.msk.f32.mxu0 %vm18_vm0, %v15_v1 }
   0x4   :  { %8 = vsyncpa [#allocation3], 0  ;;  %212 = vmatpush3.msra.mxu0 %v17_v0  ;;  %v100_v3 = vld [vmem:[%s297_s2] sm:$0xff]  ;;  %s248_s0 = smov [#allocation2]   ;;  %vm182_vm1 = vcmask 130048  }
   0x5   :  { %214 = vmatmul.mubr.msk.f32.vlgmr.msra.gmra.mrb[0].mxu0 %vm18_vm0, %v16_v2  ;;  %216 = vmatprep.subr.mxu1 %v100_v3  ;;  %s190_s20 = sshll.u32 %s248_s0, 4  ;;  %s191_s20 = int_to_ptr.vmem [resolvable:$true] %s190_s20 }
   0x6   :  { %217 = vmatpush3.msra.mxu1 %v100_v3  ;;  %s224_s1 = scalar_lea.vmem %s191_s20, 256  ;;  %p229_p1 = scmp.lt.s32.totalorder %s191_s20, %s191_s20 }
   0x7   :  { %p225_p0 = scmp.ne.s32.totalorder %s191_s20, %s224_s1  ;;  %p230_p2 = scmp.lt.s32.totalorder %s224_s1, %s224_s1 }
   0x9   :  { %p231_p3 = por %p230_p2, %p229_p1 }
   0xb   :  { %p232_p4 = pnand %p231_p3, %p225_p0 }
  0xd8   :  { %v215_v4 = vpop.f32.mrb[0].mxu0 }
  0xd9   :  { %v91_v5 = vpop.f32.mrb[1].mxu0 }
  0xda   :  { %218 = vmatprep.mubr.msk.f32.mxu1 %vm18_vm0, %v91_v5 }
  0xdb   :  { %219 = vmatmul.mubr.msk.f32.vlgmr.msra.gmra.mrb[0].mxu1 %vm18_vm0, %v215_v4 }
 0x1ae   :  { %v220_v6 = vpop.f32.mrb[0].mxu1 }
 0x1af   :  { %184 = vst.msk [vmem:[#allocation2 + $0x8] sm:$0xff] %vm182_vm1, %v220_v6  ;;  %v173_v7 = vpop.f32.mrb[1].mxu1 }
 0x1b0   :  { %183 = vst.msk [vmem:[#allocation2] sm:$0xff] %vm182_vm1, %v173_v7 }
 0x1b1   :  { %235 = shalt.err (!%p232_p4)
}
 0x1b2   :  { %s236_s22 = scalar_lea.hbm %s298_s3, 256 }
 0x1b3   :  { %p237_p5 = scmp.ne.s32.totalorder %s298_s3, %s236_s22  ;;  %p240_p6 = scmp.lt.u32.totalorder %s236_s22, %s298_s3 }
 0x1b5   :  { %p242_p7 = pnand %p240_p6, %p237_p5 }
 0x1b7   :  { %245 = shalt.err (!%p242_p7)
}
 0x1b8   :  { %s249_s27 = smov 128   ;;  %s250_s28 = smov 8  }
 0x1b9   :  { %196 = dma.vmem_to_hbm [thread:$0]  %s191_s20, 256, %s298_s3, [#allocation3], %s249_s27, %s249_s27, %s250_s28  }
 0x1ba   :  { %246 = dma.done.wait [#allocation3], 256  }
 0x1bb   :  { %247 = vsyncadd [#allocation3], 4294967040 }
 0x1bc   :  { %200 = vsyncpa [#allocation3], 1 }

</bundles_post_ra>
